<compile_context>
chip_gen: v7x
topology: tpu7x:2x2x1
jax: 0.10.0
libtpu: 0.0.40
codegen_flags: <defaults>
</compile_context>

<pallas_src>
import math
import functools

import jax
import jax.numpy as jnp
from jax import lax
from jax.experimental import pallas as pl
from jax.experimental.pallas import tpu as pltpu

# ---- module "globals" (from the PyTorch script context) --------------------
SEQ_LENGTH = 8
DIM_MODEL = 32
DIM_K = DIM_MODEL
DROPOUT_P = 0.1


def _attn_kernel(i1_ref, i2_ref, v_ref, mask_ref, o_ref, *, dim_k):
    i1 = i1_ref[...]          # (S, D)
    i2 = i2_ref[...]          # (S, D)

    # qk = i1 @ i2^T, expressed as a direct contraction on dim 1 of both
    # operands so Mosaic feeds the MXU without an explicit transpose.
    qk = lax.dot_general(
        i1, i2,
        dimension_numbers=(((1,), (1,)), ((), ())),
        preferred_element_type=jnp.float32,
    )                                                       # (S, S)

    # PyTorch: qk.div(1.0 / sqrt(dim_k))  ==  qk * sqrt(dim_k)   (one vmul)
    scaled_qk = qk * math.sqrt(dim_k)

    # Numerically stable softmax over the last dim.
    m = jnp.max(scaled_qk, axis=-1, keepdims=True)
    e = jnp.exp(scaled_qk - m)
    denom = jnp.sum(e, axis=-1, keepdims=True)
    softmax_qk = e / denom

    # Inverted dropout: mask_ref already holds 1/(1-p) for kept elements and
    # 0 for dropped ones, so dropout is a single elementwise multiply.
    dropout_qk = softmax_qk * mask_ref[...]

    # output = dropout_qk @ value
    o_ref[...] = jnp.dot(
        dropout_qk, v_ref[...], preferred_element_type=jnp.float32
    ).astype(o_ref.dtype)


def attention_forward(i1, i2, value, rng_key, dropout_p=DROPOUT_P):
    """i1, i2: (1, S, D); value: (1, S, Dv); rng_key: jax PRNG key."""
    S, D = i1.shape[-2], i1.shape[-1]
    Dv = value.shape[-1]
    i1_2d = i1.reshape(S, D).astype(jnp.float32)
    i2_2d = i2.reshape(S, D).astype(jnp.float32)
    v_2d = value.reshape(S, Dv).astype(jnp.float32)

    # Dropout mask built wrapper-side (pltpu PRNG primitives have no
    # CPU/interpret lowering; semantics identical to F.dropout in train mode).
    if dropout_p <= 0.0:
        drop_mask = jnp.ones((S, S), dtype=jnp.float32)
    elif dropout_p >= 1.0:
        drop_mask = jnp.zeros((S, S), dtype=jnp.float32)
    else:
        keep = jax.random.bernoulli(rng_key, 1.0 - dropout_p, (S, S))
        drop_mask = keep.astype(jnp.float32) * (1.0 / (1.0 - dropout_p))

    vmem = pltpu.MemorySpace.VMEM
    out = pl.pallas_call(
        functools.partial(_attn_kernel, dim_k=DIM_K),
        out_shape=jax.ShapeDtypeStruct((S, Dv), jnp.float32),
        in_specs=[
            pl.BlockSpec(memory_space=vmem),   # i1    (S, D)
            pl.BlockSpec(memory_space=vmem),   # i2    (S, D)
            pl.BlockSpec(memory_space=vmem),   # value (S, Dv)
            pl.BlockSpec(memory_space=vmem),   # dropout mask (S, S)
        ],
        out_specs=pl.BlockSpec(memory_space=vmem),
    )(i1_2d, i2_2d, v_2d, drop_mask)
    return out.reshape(1, S, Dv)


def _reference_no_dropout(i1, i2, value):
    qk = jnp.einsum("bsd,btd->bst", i1, i2)
    scaled = qk * math.sqrt(DIM_K)          # matches qk.div(1/sqrt(dim_k))
    soft = jax.nn.softmax(scaled, axis=-1)
    return jnp.einsum("bst,btd->bsd", soft, value)


if __name__ == "__main__":
    key = jax.random.PRNGKey(0)
    k1, k2, k3, k_drop = jax.random.split(key, 4)
    i1 = jax.random.normal(k1, (1, SEQ_LENGTH, DIM_MODEL), dtype=jnp.float32)
    i2 = jax.random.normal(k2, (1, SEQ_LENGTH, DIM_MODEL), dtype=jnp.float32)
    # "value" is a module-level tensor in the original script; init deterministically.
    value = jax.random.normal(k3, (1, SEQ_LENGTH, DIM_MODEL), dtype=jnp.float32)

    # Deterministic correctness check (dropout disabled).
    out_p0 = attention_forward(i1, i2, value, rng_key=k_drop, dropout_p=0.0)
    ref = _reference_no_dropout(i1, i2, value)
    assert jnp.allclose(out_p0, ref, atol=1e-4, rtol=1e-4), "mismatch vs reference"

    # Forward pass with dropout_p as in the module (stochastic, like training mode).
    out = attention_forward(i1, i2, value, rng_key=k_drop, dropout_p=DROPOUT_P)
    jax.block_until_ready(out)
    assert out.shape == (1, SEQ_LENGTH, DIM_MODEL)
    print("KERNEL_OK")
</pallas_src>

<mosaic_0001>
module attributes {stable_mosaic.version = 11 : i64} {
  func.func @_attn_kernel(%arg0: memref<8x32xf32, #tpu.memory_space<vmem>>, %arg1: memref<8x32xf32, #tpu.memory_space<vmem>>, %arg2: memref<8x32xf32, #tpu.memory_space<vmem>>, %arg3: memref<8x8xf32, #tpu.memory_space<vmem>>, %arg4: memref<8x32xf32, #tpu.memory_space<vmem>>) attributes {dimension_semantics = [], scalar_prefetch = 0 : i64, scratch_operands = 0 : i64, tpu.core_type = #tpu.core_type<tc>} {
    %c0 = arith.constant 0 : index
    %c0_0 = arith.constant 0 : index
    %0 = vector.load %arg0[%c0, %c0_0] : memref<8x32xf32, #tpu.memory_space<vmem>>, vector<8x32xf32>
    %c0_1 = arith.constant 0 : index
    %c0_2 = arith.constant 0 : index
    %1 = vector.load %arg1[%c0_1, %c0_2] : memref<8x32xf32, #tpu.memory_space<vmem>>, vector<8x32xf32>
    %cst = arith.constant dense<0.000000e+00> : vector<8x8xf32>
    %2 = tpu.matmul %0, %1, %cst {dimension_numbers = #tpu.dot_dimension_numbers<[1], [1], [0], [0], [0, 0, 1, 0], [], []>} : vector<8x32xf32>, vector<8x32xf32>, vector<8x8xf32> -> vector<8x8xf32>
    %cst_3 = arith.constant 5.65685415 : f32
    %3 = vector.broadcast %cst_3 : f32 to vector<8x8xf32>
    %4 = arith.mulf %2, %3 : vector<8x8xf32>
    %cst_4 = arith.constant dense<0xFF800000> : vector<8xf32>
    %5 = vector.multi_reduction <maximumf>, %4, %cst_4 [1] : vector<8x8xf32> to vector<8xf32>
    %6 = vector.shape_cast %5 : vector<8xf32> to vector<8x1xf32>
    %7 = vector.broadcast %6 : vector<8x1xf32> to vector<8x8xf32>
    %8 = arith.subf %4, %7 : vector<8x8xf32>
    %9 = math.exp %8 : vector<8x8xf32>
    %cst_5 = arith.constant dense<0.000000e+00> : vector<8xf32>
    %10 = vector.multi_reduction <add>, %9, %cst_5 [1] : vector<8x8xf32> to vector<8xf32>
    %11 = vector.shape_cast %10 : vector<8xf32> to vector<8x1xf32>
    %12 = vector.broadcast %11 : vector<8x1xf32> to vector<8x8xf32>
    %13 = arith.divf %9, %12 : vector<8x8xf32>
    %c0_6 = arith.constant 0 : index
    %c0_7 = arith.constant 0 : index
    %14 = vector.load %arg3[%c0_6, %c0_7] : memref<8x8xf32, #tpu.memory_space<vmem>>, vector<8x8xf32>
    %15 = arith.mulf %13, %14 : vector<8x8xf32>
    %c0_8 = arith.constant 0 : index
    %c0_9 = arith.constant 0 : index
    %16 = vector.load %arg2[%c0_8, %c0_9] : memref<8x32xf32, #tpu.memory_space<vmem>>, vector<8x32xf32>
    %cst_10 = arith.constant dense<0.000000e+00> : vector<8x32xf32>
    %17 = tpu.matmul %15, %16, %cst_10 {dimension_numbers = #tpu.dot_dimension_numbers<[1], [0], [0], [1], [0, 0, 1, 1], [], []>} : vector<8x8xf32>, vector<8x32xf32>, vector<8x32xf32> -> vector<8x32xf32>
    %c0_11 = arith.constant 0 : index
    %c0_12 = arith.constant 0 : index
    %18 = vector.load %arg4[%c0_11, %c0_12] : memref<8x32xf32, #tpu.memory_space<vmem>>, vector<8x32xf32>
    tpu.vector_store %arg4[%c0_11, %c0_12], %17 {strides = array<i32>} : memref<8x32xf32, #tpu.memory_space<vmem>>, vector<8x32xf32>,
    return
  }
}

</mosaic_0001>

<bundles_post_ra>
// kernel: tpu_custom_call.1
= control target key start
LH: loop header
LB: loop body
LE: loop exit
PB: predicated region body
PF: predicated region fallthrough
CT: control target
= control target key end

     0   :  { %9 = vsyncpa [#allocation3], 0  ;;  %s447_s0 = inlined_call_operand.hbm [shape: f32[8,32], index: 0, kind: input, shape index: {}]   ;;  %s448_s1 = inlined_call_operand.hbm [shape: f32[8,32], index: 1, kind: input, shape index: {}]   ;;  %s449_s2 = inlined_call_operand.hbm [shape: f32[8,32], index: 2, kind: input, shape index: {}]   ;;  %s450_s3 = inlined_call_operand.vmem [shape: f32[8,8], index: 3, kind: input, shape index: {}]   ;;  %s451_s4 = inlined_call_operand.hbm [shape: f32[8,32], index: 4, kind: output, shape index: {}]  }
   0x1   :  { %10 = vsyncpa [#allocation6], 0 }
   0x2   :  { %11 = vsyncpa [#allocation4], 0  ;;  %s359_s15 = smov [#allocation5]   ;;  %s360_s17 = smov [#allocation2]  }
   0x3   :  { %s28_s16 = sshll.u32 %s359_s15, 4  ;;  %s18_s18 = sshll.u32 %s360_s17, 4  ;;  %s29_s16 = int_to_ptr.vmem [resolvable:$true] %s28_s16  ;;  %s19_s18 = int_to_ptr.vmem [resolvable:$true] %s18_s18 }
   0x4   :  { %s265_s21 = scalar_lea.hbm %s448_s1, 128 }
   0x5   :  { %p266_p0 = scmp.ne.s32.totalorder %s448_s1, %s265_s21  ;;  %p269_p1 = scmp.lt.u32.totalorder %s265_s21, %s448_s1 }
   0x7   :  { %p271_p2 = pnand %p269_p1, %p266_p0 }
   0x9   :  { %274 = shalt.err (!%p271_p2)
}
   0xa   :  { %s275_s26 = scalar_lea.vmem %s29_s16, 128  ;;  %p280_p4 = scmp.lt.s32.totalorder %s29_s16, %s29_s16 }
   0xb   :  { %p276_p3 = scmp.ne.s32.totalorder %s29_s16, %s275_s26  ;;  %p281_p5 = scmp.lt.s32.totalorder %s275_s26, %s275_s26 }
   0xd   :  { %p282_p6 = por %p281_p5, %p280_p4 }
   0xf   :  { %p283_p7 = pnand %p282_p6, %p276_p3 }
  0x11   :  { %286 = shalt.err (!%p283_p7)
}
  0x12   :  { %31 = dma.hbm_to_vmem [thread:$0]  %s448_s1, 128, %s29_s16, [#allocation6]  }
  0x13   :  { %s287_s5 = scalar_lea.hbm %s447_s0, 128 }
  0x14   :  { %p288_p8 = scmp.ne.s32.totalorder %s447_s0, %s287_s5  ;;  %p291_p9 = scmp.lt.u32.totalorder %s287_s5, %s447_s0 }
  0x16   :  { %p293_p10 = pnand %p291_p9, %p288_p8 }
  0x18   :  { %296 = shalt.err (!%p293_p10)
}
  0x19   :  { %s297_s10 = scalar_lea.vmem %s19_s18, 128  ;;  %p302_p12 = scmp.lt.s32.totalorder %s19_s18, %s19_s18 }
  0x1a   :  { %p298_p11 = scmp.ne.s32.totalorder %s19_s18, %s297_s10  ;;  %p303_p13 = scmp.lt.s32.totalorder %s297_s10, %s297_s10 }
  0x1c   :  { %p304_p0 = por %p303_p13, %p302_p12 }
  0x1e   :  { %p305_p1 = pnand %p304_p0, %p298_p11 }
  0x20   :  { %308 = shalt.err (!%p305_p1)
}
  0x21   :  { %21 = dma.hbm_to_vmem [thread:$0]  %s447_s0, 128, %s19_s18, [#allocation3]  }
  0x22   :  { %s361_s12 = smov [#allocation7]   ;;  %s309_s16 = scalar_lea.hbm %s449_s2, 128 }
  0x23   :  { %s38_s13 = sshll.u32 %s361_s12, 4  ;;  %p310_p2 = scmp.ne.s32.totalorder %s449_s2, %s309_s16  ;;  %s39_s13 = int_to_ptr.vmem [resolvable:$true] %s38_s13 }
  0x24   :  { %p313_p3 = scmp.lt.u32.totalorder %s309_s16, %s449_s2 }
  0x26   :  { %p315_p4 = pnand %p313_p3, %p310_p2 }
  0x28   :  { %318 = shalt.err (!%p315_p4)
}
  0x29   :  { %s319_s22 = scalar_lea.vmem %s39_s13, 128  ;;  %p324_p6 = scmp.lt.s32.totalorder %s39_s13, %s39_s13 }
  0x2a   :  { %p320_p5 = scmp.ne.s32.totalorder %s39_s13, %s319_s22  ;;  %p325_p7 = scmp.lt.s32.totalorder %s319_s22, %s319_s22 }
  0x2c   :  { %p326_p8 = por %p325_p7, %p324_p6 }
  0x2e   :  { %p327_p9 = pnand %p326_p8, %p320_p5 }
  0x30   :  { %330 = shalt.err (!%p327_p9)
}
  0x31   :  { %41 = dma.hbm_to_vmem [thread:$0]  %s449_s2, 128, %s39_s13, [#allocation6]  }
  0x32   :  { %353 = dma.done.wait [#allocation3], 128  }
  0x33   :  { %354 = vsyncadd [#allocation3], 4294967168 }
  0x34   :  { %355 = dma.done.wait [#allocation6], 256  }
  0x35   :  { %356 = vsyncadd [#allocation6], 4294967040  ;;  %v362_v0 = vmov 0.0   ;;  %vm363_vm0 = vmmov 0   ;;  %vm55_vm1 = vcmask 261120   ;;  %v54_v1 = vld [vmem:[#allocation5] sm:$0xff] }
  0x36   :  { %245 = vmatprep.subr.mxu0 %v362_v0  ;;  %247 = vmatprep.mubr.msk.f32.mxu0 %vm363_vm0, %v362_v0  ;;  %v53_v2 = vld [vmem:[#allocation2] sm:$0xff]  ;;  %vm133_vm2 = vcmask 64512   ;;  %v147_v12 = vld [vmem:[#allocation7] sm:$0xff]  ;;  %s364_s24 = smov [#allocation8]  }
  0x37   :  { %250 = vmatprep.subr.mxu1 %v362_v0  ;;  %252 = vmatprep.mubr.msk.f32.mxu1 %vm363_vm0, %v362_v0  ;;  %v145_v15 = vld [vmem:[%s450_s3] sm:$0xff]  ;;  %s228_s25 = sshll.u32 %s364_s24, 4  ;;  %s229_s25 = int_to_ptr.vmem [resolvable:$true] %s228_s25 }
  0x38   :  { %246 = vmatpush3.xpose.msk.msra.mxu0 %vm55_vm1, %v54_v1  ;;  %251 = vmatpush3.msra.mxu1 %v147_v12  ;;  %s331_s26 = scalar_lea.vmem %s229_s25, 128  ;;  %p336_p11 = scmp.lt.s32.totalorder %s229_s25, %s229_s25 }
  0x39   :  { %p332_p10 = scmp.ne.s32.totalorder %s229_s25, %s331_s26  ;;  %p337_p12 = scmp.lt.s32.totalorder %s331_s26, %s331_s26 }
  0x3b   :  { %248 = vmatmul.mubr.msk.f32.vlgmr.msra.gmra.mrb[0].mxu0 %vm55_vm1, %v53_v2  ;;  %p338_p13 = por %p337_p12, %p336_p11 }
  0x3d   :  { %p339_p0 = pnand %p338_p13, %p332_p10 }
 0x10e   :  { %v128_v3 = vpop.f32.mrb[0].mxu0 }
 0x10f   :  { %v132_v4 = vmul.f32 5.656854, %v128_v3  ;;  %v249_v5 = vpop.f32.mrb[1].mxu0 }
 0x111   :  { %v134_v6 = vsel %vm133_vm2, %v132_v4, -inf }
 0x112   :  { %135 = vmax.xlane.f32.xlu0 %v134_v6 }
 0x19f   :  { %v136_v7 = vpop.xlane.xlu0 %135 }
 0x1a0   :  { %v137_v8 = vsub.f32 %v132_v4, %v136_v7 }
 0x1a2   :  { %v138_v9 = vmul.f32 1.442695, %v137_v8 }
 0x1a4   :  { %261 = vpow2.f32 %v138_v9 }
 0x1ae   :  { %v262_v10 = vpop.eup %261 }
 0x1af   :  { %v140_v11 = vsel %vm133_vm2, %v262_v10, 0.0 }
 0x1b0   :  { %141 = vadd.xlane.f32.xlu0 %v140_v11 }
 0x23d   :  { %v142_v13 = vpop.xlane.xlu0 %141 }
 0x23e   :  { %263 = vrcp.f32 %v142_v13 }
 0x248   :  { %v264_v14 = vpop.eup %263 }
 0x249   :  { %v144_v16 = vmul.f32 %v264_v14, %v262_v10 }
 0x24b   :  { %v146_v17 = vmul.f32 %v145_v15, %v144_v16 }
 0x24d   :  { %253 = vmatmul.mubr.msk.f32.vlgmr.msra.gmra.mrb[0].mxu1 %vm133_vm2, %v146_v17 }
 0x320   :  { %v217_v18 = vpop.f32.mrb[0].mxu1 }
 0x321   :  { %221 = vst.msk [vmem:[#allocation8] sm:$0xff] %vm55_vm1, %v217_v18  ;;  %v254_v19 = vpop.f32.mrb[1].mxu1 }
 0x322   :  { %342 = shalt.err (!%p339_p0)
}
 0x323   :  { %s343_s28 = scalar_lea.hbm %s451_s4, 128 }
 0x324   :  { %p344_p1 = scmp.ne.s32.totalorder %s451_s4, %s343_s28  ;;  %p347_p2 = scmp.lt.u32.totalorder %s343_s28, %s451_s4 }
 0x326   :  { %p349_p3 = pnand %p347_p2, %p344_p1 }
 0x328   :  { %352 = shalt.err (!%p349_p3)
}
 0x329   :  { %231 = dma.vmem_to_hbm [thread:$0]  %s229_s25, 128, %s451_s4, [#allocation4]  }
 0x32a   :  { %357 = dma.done.wait [#allocation4], 128  }
 0x32b   :  { %358 = vsyncadd [#allocation4], 4294967168 }
 0x32c   :  { %235 = vsyncpa [#allocation3], 1 }
 0x32d   :  { %236 = vsyncpa [#allocation6], 1 }
 0x32e   :  { %237 = vsyncpa [#allocation4], 1 }

</bundles_post_ra>
